<compile_context>
chip_gen: v7x
topology: tpu7x:2x2x1
jax: 0.10.0
libtpu: 0.0.40
codegen_flags: <defaults>
</compile_context>

<pallas_src>
import functools

import jax
import jax.numpy as jnp
from jax import lax
from jax.experimental import pallas as pl
from jax.experimental.pallas import tpu as pltpu


def _round_up(x, m):
    return ((x + m - 1) // m) * m


def _pick_tile(dim, max_tile):
    """Largest tile <= max_tile that divides `dim`; prefer 256-multiples (v6e/v7x MXU width)."""
    for step in (256, 128):
        if dim % step == 0:
            t = (min(max_tile, dim) // step) * step
            while t > step and dim % t != 0:
                t -= step
            if t >= step:
                return t
    return min(dim, max_tile)


def _linear_kernel_f32out(x_ref, w_ref, o_ref):
    # o_ref is resident across the k (reduction) axis, so accumulate into it
    # directly in f32 — no separate VMEM scratch and no final tile copy.
    @pl.when(pl.program_id(2) == 0)
    def _():
        o_ref[...] = jnp.zeros_like(o_ref)

    # Contract x's feature axis against the weight's in_features axis
    # (PyTorch (out, in) layout), i.e. x @ W^T, without a wrapper transpose.
    o_ref[...] += lax.dot_general(
        x_ref[...],
        w_ref[...],
        dimension_numbers=(((1,), (1,)), ((), ())),
        preferred_element_type=jnp.float32,
    )


def _linear_kernel_acc(x_ref, w_ref, o_ref, acc_ref):
    # Fallback for non-f32 outputs: f32 scratch accumulator, cast at the end.
    @pl.when(pl.program_id(2) == 0)
    def _():
        acc_ref[...] = jnp.zeros_like(acc_ref)

    acc_ref[...] += lax.dot_general(
        x_ref[...],
        w_ref[...],
        dimension_numbers=(((1,), (1,)), ((), ())),
        preferred_element_type=jnp.float32,
    )

    @pl.when(pl.program_id(2) == pl.num_programs(2) - 1)
    def _():
        o_ref[...] = acc_ref[...].astype(o_ref.dtype)


@functools.partial(jax.jit, static_argnames=("tm", "tn", "tk", "compute_dtype"))
def nett_linear_forward(x, weight, *, tm=512, tn=512, tk=1024, compute_dtype=None):
    """y = x @ weight.T   (torch.nn.Linear(num_features, num_features, bias=False))

    x:      (M, F)
    weight: (F, F)  PyTorch layout (out_features, in_features)
    compute_dtype: optional operand dtype for the MXU (e.g. jnp.bfloat16);
                   accumulation stays f32, output keeps x's dtype.
    """
    M, F = x.shape
    assert weight.shape == (F, F)

    out_dtype = x.dtype
    cdtype = jnp.dtype(compute_dtype) if compute_dtype is not None else jnp.dtype(x.dtype)

    # ---- feature-axis padding: multiple of 128; prefer 256 when F is large so
    # ---- v6e/v7x can use 256-wide tiles without falling back to 128. --------
    F_pad = _round_up(F, 128)
    if F_pad > 256 and F_pad % 256 != 0:
        F_pad = _round_up(F_pad, 256)

    # ---- batch tiling: choose tm to minimize M padding (no round_up(M, tm)). --
    rounder = 16 if cdtype == jnp.dtype(jnp.bfloat16) else 8
    if M <= tm:
        tm_eff = _round_up(M, rounder)
    else:
        n_m = -(-M // tm)                       # number of M blocks
        tm_eff = _round_up(-(-M // n_m), rounder)
    M_pad = _round_up(M, tm_eff)

    tn_eff = _pick_tile(F_pad, tn)
    tk_eff = _pick_tile(F_pad, tk)

    grid_m = M_pad // tm_eff
    grid_n = F_pad // tn_eff
    # v7x megacore: keep at least one 'parallel' axis with >= 2 blocks when possible.
    if grid_m == 1 and grid_n == 1 and F_pad >= 256:
        tn_eff = _pick_tile(F_pad, F_pad // 2)
        grid_n = F_pad // tn_eff
    grid_k = F_pad // tk_eff

    if (M_pad, F_pad) != (M, F):
        x = jnp.pad(x, ((0, M_pad - M), (0, F_pad - F)))
    if F_pad != F:
        # TODO(synk): for F not aligned to 128 this is one extra F^2 HBM pass; an
        # in-kernel K-remainder mask would avoid it (aligned fast path skips it).
        weight = jnp.pad(weight, ((0, F_pad - F), (0, F_pad - F)))

    if cdtype != jnp.dtype(x.dtype):
        x = x.astype(cdtype)
    if cdtype != jnp.dtype(weight.dtype):
        weight = weight.astype(cdtype)

    cb = cdtype.itemsize
    ob = jnp.dtype(out_dtype).itemsize

    if jnp.dtype(out_dtype) == jnp.dtype(jnp.float32):
        kernel = _linear_kernel_f32out
        scratch = []
    else:
        kernel = _linear_kernel_acc
        scratch = [pltpu.VMEM((tm_eff, tn_eff), jnp.float32)]

    out = pl.pallas_call(
        kernel,
        out_shape=jax.ShapeDtypeStruct((M_pad, F_pad), out_dtype),
        grid_spec=pltpu.PrefetchScalarGridSpec(
            num_scalar_prefetch=0,
            grid=(grid_m, grid_n, grid_k),
            in_specs=[
                pl.BlockSpec((tm_eff, tk_eff), lambda i, j, k: (i, k)),  # x tile
                pl.BlockSpec((tn_eff, tk_eff), lambda i, j, k: (j, k)),  # W tile (out, in)
            ],
            out_specs=pl.BlockSpec((tm_eff, tn_eff), lambda i, j, k: (i, j)),
            scratch_shapes=scratch,
        ),
        # No vmem_limit_bytes override: tile footprint fits the default scoped
        # budget on all generations (and 64 MiB == entire per-TC VMEM on v7x).
        compiler_params=pltpu.CompilerParams(
            dimension_semantics=("parallel", "parallel", "arbitrary"),
        ),
        cost_estimate=pl.CostEstimate(
            flops=2 * M_pad * F_pad * F_pad,
            transcendentals=0,
            # Actual DMA volume: x streamed grid_n times, W streamed grid_m times.
            bytes_accessed=(grid_n * M_pad * F_pad * cb
                            + grid_m * F_pad * F_pad * cb
                            + M_pad * F_pad * ob),
        ),
    )(x, weight)

    return out[:M, :F]


if __name__ == "__main__":
    key = jax.random.PRNGKey(0)
    kx, kw, kx2, kw2 = jax.random.split(key, 4)

    # ---- Case 1: aligned small shapes, f32 path ----------------------------
    batch, num_features = 16, 128
    x = jax.random.normal(kx, (batch, num_features), dtype=jnp.float32)
    # Deterministic init mimicking nn.Linear's kaiming-uniform:
    # U(-1/sqrt(fan_in), 1/sqrt(fan_in)), fan_in = num_features.
    bound = 1.0 / (num_features ** 0.5)
    weight = jax.random.uniform(
        kw, (num_features, num_features), dtype=jnp.float32,
        minval=-bound, maxval=bound,
    )
    y = jax.block_until_ready(nett_linear_forward(x, weight))
    y_ref = x @ weight.T
    assert y.shape == (batch, num_features)
    assert jnp.allclose(y, y_ref, atol=1e-5, rtol=1e-5), "mismatch vs reference (case 1)"

    # ---- Case 2: ragged shapes (exercises padding path) ---------------------
    batch2, num_features2 = 10, 96
    x2 = jax.random.normal(kx2, (batch2, num_features2), dtype=jnp.float32)
    bound2 = 1.0 / (num_features2 ** 0.5)
    weight2 = jax.random.uniform(
        kw2, (num_features2, num_features2), dtype=jnp.float32,
        minval=-bound2, maxval=bound2,
    )
    y2 = jax.block_until_ready(nett_linear_forward(x2, weight2))
    y2_ref = x2 @ weight2.T
    assert y2.shape == (batch2, num_features2)
    assert jnp.allclose(y2, y2_ref, atol=1e-5, rtol=1e-5), "mismatch vs reference (case 2)"

    # ---- Case 3: bf16 operand path (f32 accumulation/output), loose tol -----
    y3 = jax.block_until_ready(
        nett_linear_forward(x, weight, compute_dtype=jnp.bfloat16))
    assert y3.shape == (batch, num_features)
    assert y3.dtype == jnp.float32
    assert jnp.allclose(y3, y_ref, atol=5e-2, rtol=5e-2), "mismatch vs reference (case 3, bf16)"

    print("KERNEL_OK")
</pallas_src>

<mosaic_0001>
module attributes {stable_mosaic.version = 11 : i64} {
  func.func @_linear_kernel_f32out(%arg0: i32, %arg1: i32, %arg2: i32, %arg3: memref<16x128xf32, #tpu.memory_space<vmem>>, %arg4: memref<128x128xf32, #tpu.memory_space<vmem>>, %arg5: memref<16x128xf32, #tpu.memory_space<vmem>>) attributes {dimension_semantics = [#tpu.dimension_semantics<parallel>, #tpu.dimension_semantics<parallel>, #tpu.dimension_semantics<arbitrary>], iteration_bounds = array<i64: 1, 1, 1>, scalar_prefetch = 0 : i64, scratch_operands = 0 : i64, tpu.core_type = #tpu.core_type<tc>, window_params = [{transform_indices = @transform_0, window_bounds = array<i64: 16, 128>}, {transform_indices = @transform_1, window_bounds = array<i64: 128, 128>}, {transform_indices = @transform_2, window_bounds = array<i64: 16, 128>}]} {
    %c0_i32 = arith.constant 0 : i32
    %0 = arith.cmpi eq, %arg2, %c0_i32 : i32
    %1 = arith.extui %0 : i1 to i32
    %c0_i32_0 = arith.constant 0 : i32
    %2 = arith.cmpi ne, %1, %c0_i32_0 : i32
    scf.if %2 {
      %cst_8 = arith.constant 0.000000e+00 : f32
      %9 = vector.broadcast %cst_8 : f32 to vector<16x128xf32>
      %c0_9 = arith.constant 0 : index
      %c0_10 = arith.constant 0 : index
      %10 = vector.load %arg5[%c0_9, %c0_10] : memref<16x128xf32, #tpu.memory_space<vmem>>, vector<16x128xf32>
      tpu.vector_store %arg5[%c0_9, %c0_10], %9 {strides = array<i32>} : memref<16x128xf32, #tpu.memory_space<vmem>>, vector<16x128xf32>,
    } else {
    }
    %c0 = arith.constant 0 : index
    %c0_1 = arith.constant 0 : index
    %3 = vector.load %arg5[%c0, %c0_1] : memref<16x128xf32, #tpu.memory_space<vmem>>, vector<16x128xf32>
    %c0_2 = arith.constant 0 : index
    %c0_3 = arith.constant 0 : index
    %4 = vector.load %arg3[%c0_2, %c0_3] : memref<16x128xf32, #tpu.memory_space<vmem>>, vector<16x128xf32>
    %c0_4 = arith.constant 0 : index
    %c0_5 = arith.constant 0 : index
    %5 = vector.load %arg4[%c0_4, %c0_5] : memref<128x128xf32, #tpu.memory_space<vmem>>, vector<128x128xf32>
    %cst = arith.constant dense<0.000000e+00> : vector<16x128xf32>
    %6 = tpu.matmul %4, %5, %cst {dimension_numbers = #tpu.dot_dimension_numbers<[1], [1], [0], [0], [0, 0, 1, 0], [], []>} : vector<16x128xf32>, vector<128x128xf32>, vector<16x128xf32> -> vector<16x128xf32>
    %7 = arith.addf %3, %6 : vector<16x128xf32>
    %c0_6 = arith.constant 0 : index
    %c0_7 = arith.constant 0 : index
    %8 = vector.load %arg5[%c0_6, %c0_7] : memref<16x128xf32, #tpu.memory_space<vmem>>, vector<16x128xf32>
    tpu.vector_store %arg5[%c0_6, %c0_7], %7 {strides = array<i32>} : memref<16x128xf32, #tpu.memory_space<vmem>>, vector<16x128xf32>,
    return
  }
  func.func @transform_0(%arg0: i32, %arg1: i32, %arg2: i32) -> (i32, i32) {
    %c0_i32 = arith.constant 0 : i32
    return %arg0, %arg2 : i32, i32
  }
  func.func @transform_1(%arg0: i32, %arg1: i32, %arg2: i32) -> (i32, i32) {
    %c0_i32 = arith.constant 0 : i32
    return %arg1, %arg2 : i32, i32
  }
  func.func @transform_2(%arg0: i32, %arg1: i32, %arg2: i32) -> (i32, i32) {
    %c0_i32 = arith.constant 0 : i32
    return %arg0, %arg1 : i32, i32
  }
}

</mosaic_0001>

<bundles_post_ra>
// kernel: nett_linear_forward.1
= control target key start
LH: loop header
LB: loop body
LE: loop exit
PB: predicated region body
PF: predicated region fallthrough
CT: control target
= control target key end

     0   :  { %7 = vsyncpa [#allocation3], 0  ;;  %s391_s0 = inlined_call_operand.hbm [shape: f32[16,128], index: 0, kind: input, shape index: {}]   ;;  %s392_s1 = inlined_call_operand.hbm [shape: f32[128,128], index: 1, kind: input, shape index: {}]   ;;  %s393_s2 = inlined_call_operand.hbm [shape: f32[16,128], index: 2, kind: output, shape index: {}]  }
   0x1   :  { %8 = vsyncpa [#allocation6], 0 }
   0x2   :  { %9 = vsyncpa [#allocation4], 0  ;;  %s326_s9 = smov [#allocation2]   ;;  %s254_s13 = scalar_lea.hbm %s391_s0, 256 }
   0x3   :  { %s15_s10 = sshll.u32 %s326_s9, 4  ;;  %p255_p0 = scmp.ne.s32.totalorder %s391_s0, %s254_s13  ;;  %s16_s10 = int_to_ptr.vmem [resolvable:$true] %s15_s10 }
   0x4   :  { %p258_p1 = scmp.lt.u32.totalorder %s254_s13, %s391_s0 }
   0x6   :  { %p260_p2 = pnand %p258_p1, %p255_p0 }
   0x8   :  { %263 = shalt.err (!%p260_p2)
}
   0x9   :  { %s264_s18 = scalar_lea.vmem %s16_s10, 256  ;;  %p269_p4 = scmp.lt.s32.totalorder %s16_s10, %s16_s10 }
   0xa   :  { %p265_p3 = scmp.ne.s32.totalorder %s16_s10, %s264_s18  ;;  %p270_p5 = scmp.lt.s32.totalorder %s264_s18, %s264_s18 }
   0xc   :  { %p271_p6 = por %p270_p5, %p269_p4 }
   0xe   :  { %p272_p7 = pnand %p271_p6, %p265_p3 }
  0x10   :  { %275 = shalt.err (!%p272_p7)
}
  0x11   :  { %s327_s19 = smov 128   ;;  %s328_s20 = smov 8  }
  0x12   :  { %21 = dma.hbm_to_vmem [thread:$0]  %s391_s0, 256, %s16_s10, [#allocation3], %s327_s19, %s327_s19, %s328_s20  }
  0x13   :  { %s329_s23 = smov [#allocation5]   ;;  %s276_s27 = scalar_lea.hbm %s392_s1, 2048 }
  0x14   :  { %s27_s24 = sshll.u32 %s329_s23, 4  ;;  %p277_p8 = scmp.ne.s32.totalorder %s392_s1, %s276_s27  ;;  %s28_s24 = int_to_ptr.vmem [resolvable:$true] %s27_s24 }
  0x15   :  { %p280_p9 = scmp.lt.u32.totalorder %s276_s27, %s392_s1 }
  0x17   :  { %p282_p10 = pnand %p280_p9, %p277_p8 }
  0x19   :  { %285 = shalt.err (!%p282_p10)
}
  0x1a   :  { %s286_s4 = scalar_lea.vmem %s28_s24, 2048  ;;  %p291_p12 = scmp.lt.s32.totalorder %s28_s24, %s28_s24 }
  0x1b   :  { %p287_p11 = scmp.ne.s32.totalorder %s28_s24, %s286_s4  ;;  %p292_p13 = scmp.lt.s32.totalorder %s286_s4, %s286_s4 }
  0x1d   :  { %p293_p0 = por %p292_p13, %p291_p12 }
  0x1f   :  { %p294_p1 = pnand %p293_p0, %p287_p11 }
  0x21   :  { %297 = shalt.err (!%p294_p1)
}
  0x22   :  { %33 = dma.hbm_to_vmem [thread:$0]  %s392_s1, 2048, %s28_s24, [#allocation6], %s327_s19, %s327_s19, %s328_s20  }
  0x23   :  { %320 = dma.done.wait [#allocation3], 256  }
  0x24   :  { %321 = vsyncadd [#allocation3], 4294967040 }
  0x25   :  { %322 = dma.done.wait [#allocation6], 2048  }
  0x26   :  { %323 = vsyncadd [#allocation6], 4294965248  ;;  %v50_v0 = vld [vmem:[#allocation5] sm:$0xff]  ;;  %v51_v1 = vld [vmem:[#allocation5 + $0x8] sm:$0xff]  ;;  %s330_s1 = smov [#allocation7]  }
  0x27   :  { %v52_v2 = vld [vmem:[#allocation5 + $0x10] sm:$0xff]  ;;  %v216_v3 = vpack.c.bf16 %v51_v1, %v50_v0  ;;  %v53_v4 = vld [vmem:[#allocation5 + $0x18] sm:$0xff]  ;;  %v54_v7 = vld [vmem:[#allocation5 + $0x20] sm:$0xff]  ;;  %s150_s6 = sshll.u32 %s330_s1, 4  ;;  %s151_s6 = int_to_ptr.vmem [resolvable:$true] %s150_s6 }
  0x28   :  { %v220_v5 = vpack.c.bf16 %v53_v4, %v52_v2  ;;  %v48_v6 = vld [vmem:[#allocation2] sm:$0xff]  ;;  %v55_v8 = vld [vmem:[#allocation5 + $0x28] sm:$0xff]  ;;  %v57_v11 = vld [vmem:[#allocation5 + $0x38] sm:$0xff]  ;;  %s298_s7 = scalar_lea.vmem %s151_s6, 256  ;;  %p303_p3 = scmp.lt.s32.totalorder %s151_s6, %s151_s6 }
  0x29   :  { %217 = vmatprep.subr.bf16.mxu0 %v216_v3  ;;  %213 = vmatprep.mubr.f32.mxu0 %v48_v6  ;;  %v224_v9 = vpack.c.bf16 %v55_v8, %v54_v7  ;;  %v56_v10 = vld [vmem:[#allocation5 + $0x30] sm:$0xff]  ;;  %v58_v13 = vld [vmem:[#allocation5 + $0x40] sm:$0xff]  ;;  %v59_v14 = vld [vmem:[#allocation5 + $0x48] sm:$0xff]  ;;  %p299_p2 = scmp.ne.s32.totalorder %s151_s6, %s298_s7  ;;  %p304_p4 = scmp.lt.s32.totalorder %s298_s7, %s298_s7 }
  0x2a   :  { %219 = vmatpush3.bf16.xpose.msra.mxu0 %v216_v3  ;;  %v228_v12 = vpack.c.bf16 %v57_v11, %v56_v10  ;;  %v232_v15 = vpack.c.bf16 %v59_v14, %v58_v13  ;;  %v60_v16 = vld [vmem:[#allocation5 + $0x50] sm:$0xff]  ;;  %v61_v17 = vld [vmem:[#allocation5 + $0x58] sm:$0xff]  ;;  %v62_v19 = vld [vmem:[#allocation5 + $0x60] sm:$0xff] }
  0x2b   :  { %221 = vmatprep.subr.bf16.mxu0 %v220_v5  ;;  %v236_v18 = vpack.c.bf16 %v61_v17, %v60_v16  ;;  %v63_v20 = vld [vmem:[#allocation5 + $0x68] sm:$0xff]  ;;  %v64_v22 = vld [vmem:[#allocation5 + $0x70] sm:$0xff]  ;;  %v65_v23 = vld [vmem:[#allocation5 + $0x78] sm:$0xff]  ;;  %p305_p5 = por %p304_p4, %p303_p3 }
  0x2c   :  { %v240_v21 = vpack.c.bf16 %v63_v20, %v62_v19  ;;  %v244_v24 = vpack.c.bf16 %v65_v23, %v64_v22  ;;  %v49_v25 = vld [vmem:[#allocation2 + $0x8] sm:$0xff] }
  0x2d   :  { %p306_p6 = pnand %p305_p5, %p299_p2 }
  0x32   :  { %223 = vmatpush3.bf16.xpose.msra.mxu0 %v220_v5 }
  0x33   :  { %225 = vmatprep.subr.bf16.mxu0 %v224_v9 }
  0x3a   :  { %227 = vmatpush3.bf16.xpose.msra.mxu0 %v224_v9 }
  0x3b   :  { %229 = vmatprep.subr.bf16.mxu0 %v228_v12 }
  0x42   :  { %231 = vmatpush3.bf16.xpose.msra.mxu0 %v228_v12 }
  0x43   :  { %233 = vmatprep.subr.bf16.mxu0 %v232_v15 }
  0x4a   :  { %235 = vmatpush3.bf16.xpose.msra.mxu0 %v232_v15 }
  0x4b   :  { %237 = vmatprep.subr.bf16.mxu0 %v236_v18 }
  0x52   :  { %239 = vmatpush3.bf16.xpose.msra.mxu0 %v236_v18 }
  0x53   :  { %241 = vmatprep.subr.bf16.mxu0 %v240_v21 }
  0x5a   :  { %243 = vmatpush3.bf16.xpose.msra.mxu0 %v240_v21 }
  0x5b   :  { %245 = vmatprep.subr.bf16.mxu0 %v244_v24 }
  0x62   :  { %247 = vmatpush3.bf16.xpose.msra.mxu0 %v244_v24 }
  0x69   :  { %214 = vmatmul.mubr.f32.vlgmr.msra.gmra.mrb[0].mxu0 %v49_v25 }
 0x13c   :  { %v215_v26 = vpop.f32.mrb[0].mxu0 }
 0x13d   :  { %v132_v27 = vpop.f32.mrb[1].mxu0  ;;  %144 = vst [vmem:[#allocation7 + $0x8] sm:$0xff] %v215_v26 }
 0x13e   :  { %143 = vst [vmem:[#allocation7] sm:$0xff] %v132_v27 }
 0x13f   :  { %309 = shalt.err (!%p306_p6)
}
 0x140   :  { %s310_s10 = scalar_lea.hbm %s393_s2, 256 }
 0x141   :  { %p311_p7 = scmp.ne.s32.totalorder %s393_s2, %s310_s10  ;;  %p314_p8 = scmp.lt.u32.totalorder %s310_s10, %s393_s2 }
 0x143   :  { %p316_p9 = pnand %p314_p8, %p311_p7 }
 0x145   :  { %319 = shalt.err (!%p316_p9)
}
 0x146   :  { %156 = dma.vmem_to_hbm [thread:$0]  %s151_s6, 256, %s393_s2, [#allocation4], %s327_s19, %s327_s19, %s328_s20  }
 0x147   :  { %324 = dma.done.wait [#allocation4], 256  }
 0x148   :  { %325 = vsyncadd [#allocation4], 4294967040 }
 0x149   :  { %160 = vsyncpa [#allocation3], 1 }
 0x14a   :  { %161 = vsyncpa [#allocation6], 1 }
 0x14b   :  { %162 = vsyncpa [#allocation4], 1 }

</bundles_post_ra>
